<compile_context>
chip_gen: v5e
topology: v5e:2x2
jax: 0.10.0
libtpu: 0.0.40
codegen_flags: <defaults>
</compile_context>

<pallas_src>
import functools

import jax
import jax.numpy as jnp
from jax.experimental import pallas as pl
from jax.experimental.pallas import tpu as pltpu


# ---------------------------------------------------------------------------
# Hardware / sizing helpers
# ---------------------------------------------------------------------------
def _vmem_capacity_bytes():
    """Physical VMEM per core; conservative (v7x = 64 MiB) if the query fails."""
    try:
        info = pltpu.get_tpu_info()
        cap = getattr(info, "vmem_capacity_bytes", None)
        if cap:
            return int(cap)
    except Exception:
        pass
    return 64 << 20


def _round_up(x, m):
    return ((x + m - 1) // m) * m


# ---------------------------------------------------------------------------
# Kernels
# ---------------------------------------------------------------------------
def _fused_kernel(x_ref, w_ref, b_ref, o_ref, *, eps, inv_count):
    """Single-read path: stats + normalize on a full per-batch (1, N, T) slab."""
    xf = x_ref[...].astype(jnp.float32)                  # (1, N, T)
    mean = jnp.sum(xf) * inv_count                       # scalar
    centered = xf - mean
    var = jnp.sum(centered * centered) * inv_count       # exact two-pass variance
    inv_std = jax.lax.rsqrt(var + eps)
    w = w_ref[...].astype(jnp.float32)[None]             # (1, N, 1)
    b = b_ref[...].astype(jnp.float32)[None]
    o_ref[...] = (centered * (w * inv_std) + b).astype(o_ref.dtype)


def _stats_kernel(x_ref, w_ref, b_ref, scale_ref, shift_ref, acc_ref, *,
                  eps, inv_count, chunk, total_t, tile_t, ragged):
    """Pass 1: VMEM-vector partial sums over T tiles; finalize scale/shift."""
    t = pl.program_id(1)

    @pl.when(t == 0)
    def _():
        acc_ref[...] = jnp.zeros_like(acc_ref)

    valid = total_t - t * tile_t        # only < tile_t on the ragged tail tile

    def load_chunk(c):
        piece = x_ref[0, :, c * chunk:(c + 1) * chunk].astype(jnp.float32)
        if ragged:
            lane = jax.lax.broadcasted_iota(jnp.int32, piece.shape, 1) + c * chunk
            piece = jnp.where(lane < valid, piece, 0.0)   # mask padded lanes
        return piece

    # Lane-aligned partial sums: pure VPU adds per tile (lane slices at
    # 128-aligned offsets are free vreg selections); the cross-lane (XLU)
    # reduce + scalar extraction happens only once per batch below.
    piece = load_chunk(0)
    ssum = piece
    ssq = piece * piece
    for c in range(1, tile_t // chunk):
        piece = load_chunk(c)
        ssum = ssum + piece
        ssq = ssq + piece * piece
    acc_ref[0] = acc_ref[0] + ssum
    acc_ref[1] = acc_ref[1] + ssq

    # NOTE: the (1, N, 1) outputs stay resident across the t axis and are only
    # written on the last t step -> the t axis must remain "arbitrary".
    @pl.when(t == pl.num_programs(1) - 1)
    def _():
        mean = jnp.sum(acc_ref[0]) * inv_count
        var = jnp.maximum(jnp.sum(acc_ref[1]) * inv_count - mean * mean, 0.0)
        inv_std = jax.lax.rsqrt(var + eps)
        w = w_ref[...].astype(jnp.float32)                # (N, 1)
        b = b_ref[...].astype(jnp.float32)
        scale = w * inv_std
        shift = b - mean * scale
        scale_ref[...] = scale[None]                      # (1, N, 1)
        shift_ref[...] = shift[None]


def _norm_kernel(x_ref, scale_ref, shift_ref, o_ref):
    """Pass 2: y = x * scale + shift (one multiply-add per element)."""
    y = x_ref[...].astype(jnp.float32) * scale_ref[...] + shift_ref[...]
    o_ref[...] = y.astype(o_ref.dtype)


# ---------------------------------------------------------------------------
# Wrapper
# ---------------------------------------------------------------------------
def gln_forward(x, weight, bias, eps=1e-6, *, _force_tiled=False, _tile_t=None):
    """Global layer norm (Conv-TasNet gLN). x: (B, N, T); weight/bias: (N, 1)."""
    B, N, T = x.shape
    itemsize = jnp.dtype(x.dtype).itemsize
    inv_count = 1.0 / float(N * T)

    vmem_cap = _vmem_capacity_bytes()
    vmem_budget = int(vmem_cap * 0.7)          # headroom under physical VMEM

    # ---------------- fused single-read path --------------------------------
    slab = N * T * itemsize
    slab_f32 = N * T * 4
    # 2x double-buffered input + 2x output blocks + f32 working copies + slack.
    fused_need = 4 * slab + 2 * slab_f32 + (2 << 20)

    if fused_need <= vmem_budget and not _force_tiled:
        kernel = functools.partial(_fused_kernel, eps=float(eps),
                                   inv_count=inv_count)
        return pl.pallas_call(
            kernel,
            out_shape=jax.ShapeDtypeStruct((B, N, T), x.dtype),
            grid_spec=pltpu.PrefetchScalarGridSpec(
                num_scalar_prefetch=0,
                grid=(B,),
                in_specs=[
                    pl.BlockSpec((1, N, T), lambda b: (b, 0, 0)),
                    pl.BlockSpec((N, 1), lambda b: (0, 0)),
                    pl.BlockSpec((N, 1), lambda b: (0, 0)),
                ],
                out_specs=pl.BlockSpec((1, N, T), lambda b: (b, 0, 0)),
            ),
            compiler_params=pltpu.CompilerParams(
                dimension_semantics=("parallel",),
                vmem_limit_bytes=int(min(max(fused_need, 16 << 20), vmem_budget)),
            ),
        )(x, weight, bias)

    # ---------------- tiled two-pass path ------------------------------------
    # Byte-budgeted time tile: ~4 MiB blocks on 128 MiB-VMEM parts (v5e/v6e),
    # ~2 MiB on v7x's 64 MiB VMEM (3.2 TB/s makes per-step overhead relatively
    # larger, but double-buffered headroom is tighter).
    target_block = (4 << 20) if vmem_cap >= (96 << 20) else (2 << 20)
    if _tile_t is not None:
        tT = int(_tile_t)
    elif T < 128:
        tT = T                                   # full-dim exemption
    else:
        tT = max(128, (target_block // (N * itemsize)) // 128 * 128)
        tT = min(tT, _round_up(T, 128))
    n_t = int(pl.cdiv(T, tT))
    ragged = (T % tT) != 0
    chunk = 128 if tT % 128 == 0 else tT

    blk = N * tT * itemsize
    blk_f32 = N * tT * 4
    p1_need = 2 * blk + 2 * blk_f32 + 2 * N * chunk * 4 + (2 << 20)
    p2_need = 4 * blk + 2 * blk_f32 + (2 << 20)
    vmem_limit = int(min(max(p1_need, p2_need, 16 << 20), vmem_budget))

    # -------- pass 1: per-batch statistics -> folded (scale, shift) ---------
    # TODO(synk): when B == 1 on v7x, split the t axis into a leading size-2
    # "parallel" dim with per-half partial sums so both TensorCores share pass 1.
    stats_kernel = functools.partial(
        _stats_kernel, eps=float(eps), inv_count=inv_count, chunk=chunk,
        total_t=T, tile_t=tT, ragged=ragged)
    scale, shift = pl.pallas_call(
        stats_kernel,
        out_shape=(
            jax.ShapeDtypeStruct((B, N, 1), jnp.float32),
            jax.ShapeDtypeStruct((B, N, 1), jnp.float32),
        ),
        grid_spec=pltpu.PrefetchScalarGridSpec(
            num_scalar_prefetch=0,
            grid=(B, n_t),
            in_specs=[
                pl.BlockSpec((1, N, tT), lambda b, t: (b, 0, t)),
                pl.BlockSpec((N, 1), lambda b, t: (0, 0)),
                pl.BlockSpec((N, 1), lambda b, t: (0, 0)),
            ],
            out_specs=(
                pl.BlockSpec((1, N, 1), lambda b, t: (b, 0, 0)),
                pl.BlockSpec((1, N, 1), lambda b, t: (b, 0, 0)),
            ),
            scratch_shapes=[pltpu.VMEM((2, N, chunk), jnp.float32)],
        ),
        compiler_params=pltpu.CompilerParams(
            # t is a reduction axis (resident accumulator/output): keep "arbitrary".
            dimension_semantics=("parallel", "arbitrary"),
            vmem_limit_bytes=vmem_limit,
        ),
    )(x, weight, bias)

    # -------- pass 2: normalization, T-tiled, fully parallel -----------------
    out = pl.pallas_call(
        _norm_kernel,
        out_shape=jax.ShapeDtypeStruct((B, N, T), x.dtype),
        grid_spec=pltpu.PrefetchScalarGridSpec(
            num_scalar_prefetch=0,
            grid=(B, n_t),
            in_specs=[
                pl.BlockSpec((1, N, tT), lambda b, t: (b, 0, t)),
                pl.BlockSpec((1, N, 1), lambda b, t: (b, 0, 0)),
                pl.BlockSpec((1, N, 1), lambda b, t: (b, 0, 0)),
            ],
            out_specs=pl.BlockSpec((1, N, tT), lambda b, t: (b, 0, t)),
        ),
        compiler_params=pltpu.CompilerParams(
            dimension_semantics=("parallel", "parallel"),
            vmem_limit_bytes=vmem_limit,
        ),
    )(x, scale, shift)
    return out


def gln_reference(x, weight, bias, eps=1e-6):
    xf = x.astype(jnp.float32)
    e = jnp.mean(xf, axis=(1, 2), keepdims=True)
    var = jnp.mean((xf - e) ** 2, axis=(1, 2), keepdims=True)
    y = (xf - e) / jnp.sqrt(var + eps) * weight[None] + bias[None]
    return y.astype(x.dtype)


if __name__ == "__main__":
    key = jax.random.PRNGKey(0)
    k1, k2, k3 = jax.random.split(key, 3)

    # Small shapes consistent with the module: batch=2, nt=4 channels, T=16.
    B, N, T = 2, 4, 16
    x = jax.random.normal(k1, (B, N, T), dtype=jnp.float32)
    weight = jnp.ones((N, 1), dtype=jnp.float32)   # nn.Parameter(torch.ones(nt, 1))
    bias = jnp.zeros((N, 1), dtype=jnp.float32)    # nn.Parameter(torch.zeros(nt, 1))

    out = jax.block_until_ready(gln_forward(x, weight, bias, eps=1e-6))
    ref = gln_reference(x, weight, bias, eps=1e-6)
    assert out.shape == (B, N, T)
    assert jnp.allclose(out, ref, atol=1e-5, rtol=1e-5), "fused path mismatch"

    # Also exercise the tiled two-pass path with a ragged (masked) tail tile.
    B2, N2, T2 = 2, 8, 400                         # 400 = 3*128 + 16
    x2 = jax.random.normal(k2, (B2, N2, T2), dtype=jnp.float32)
    w2 = jax.random.normal(k3, (N2, 1), dtype=jnp.float32)
    b2 = jax.random.normal(key, (N2, 1), dtype=jnp.float32)
    out2 = jax.block_until_ready(
        gln_forward(x2, w2, b2, eps=1e-6, _force_tiled=True, _tile_t=128))
    ref2 = gln_reference(x2, w2, b2, eps=1e-6)
    assert jnp.allclose(out2, ref2, atol=1e-4, rtol=1e-4), "tiled path mismatch"

    print("KERNEL_OK")
</pallas_src>

<mosaic_0001>
module attributes {stable_mosaic.version = 11 : i64} {
  func.func @_fused_kernel(%arg0: i32, %arg1: memref<1x4x16xf32, #tpu.memory_space<vmem>>, %arg2: memref<4x1xf32, #tpu.memory_space<vmem>>, %arg3: memref<4x1xf32, #tpu.memory_space<vmem>>, %arg4: memref<1x4x16xf32, #tpu.memory_space<vmem>>) attributes {dimension_semantics = [#tpu.dimension_semantics<parallel>], iteration_bounds = array<i64: 2>, scalar_prefetch = 0 : i64, scratch_operands = 0 : i64, tpu.core_type = #tpu.core_type<tc>, window_params = [{transform_indices = @transform_0, window_bounds = array<i64: 1, 4, 16>}, {pipeline_mode = #tpu.pipeline_mode<synchronous>, transform_indices = @transform_1, window_bounds = array<i64: 4, 1>}, {pipeline_mode = #tpu.pipeline_mode<synchronous>, transform_indices = @transform_2, window_bounds = array<i64: 4, 1>}, {transform_indices = @transform_3, window_bounds = array<i64: 1, 4, 16>}]} {
    %c0 = arith.constant 0 : index
    %c0_0 = arith.constant 0 : index
    %c0_1 = arith.constant 0 : index
    %0 = vector.load %arg1[%c0, %c0_0, %c0_1] : memref<1x4x16xf32, #tpu.memory_space<vmem>>, vector<1x4x16xf32>
    %1 = vector.shape_cast %0 : vector<1x4x16xf32> to vector<1x1x4x16xf32>
    %cst = arith.constant dense<0.000000e+00> : vector<1xf32>
    %2 = vector.multi_reduction <add>, %1, %cst [1, 2, 3] : vector<1x1x4x16xf32> to vector<1xf32>
    %3 = vector.shape_cast %2 : vector<1xf32> to vector<1x1x1x1xf32>
    %4 = vector.extract %3[0, 0, 0, 0] : f32 from vector<1x1x1x1xf32>
    %cst_2 = arith.constant 1.562500e-02 : f32
    %5 = arith.mulf %4, %cst_2 : f32
    %6 = vector.broadcast %5 : f32 to vector<1x4x16xf32>
    %7 = arith.subf %0, %6 : vector<1x4x16xf32>
    %8 = arith.mulf %7, %7 : vector<1x4x16xf32>
    %9 = vector.shape_cast %8 : vector<1x4x16xf32> to vector<1x1x4x16xf32>
    %cst_3 = arith.constant dense<0.000000e+00> : vector<1xf32>
    %10 = vector.multi_reduction <add>, %9, %cst_3 [1, 2, 3] : vector<1x1x4x16xf32> to vector<1xf32>
    %11 = vector.shape_cast %10 : vector<1xf32> to vector<1x1x1x1xf32>
    %12 = vector.extract %11[0, 0, 0, 0] : f32 from vector<1x1x1x1xf32>
    %cst_4 = arith.constant 1.562500e-02 : f32
    %13 = arith.mulf %12, %cst_4 : f32
    %cst_5 = arith.constant 9.99999997E-7 : f32
    %14 = arith.addf %13, %cst_5 : f32
    %15 = math.rsqrt %14 : f32
    %c0_6 = arith.constant 0 : index
    %c0_7 = arith.constant 0 : index
    %16 = vector.load %arg2[%c0_6, %c0_7] : memref<4x1xf32, #tpu.memory_space<vmem>>, vector<4x1xf32>
    %17 = vector.shape_cast %16 : vector<4x1xf32> to vector<1x4x1xf32>
    %c0_8 = arith.constant 0 : index
    %c0_9 = arith.constant 0 : index
    %18 = vector.load %arg3[%c0_8, %c0_9] : memref<4x1xf32, #tpu.memory_space<vmem>>, vector<4x1xf32>
    %19 = vector.shape_cast %18 : vector<4x1xf32> to vector<1x4x1xf32>
    %20 = vector.broadcast %15 : f32 to vector<1x4x1xf32>
    %21 = arith.mulf %17, %20 : vector<1x4x1xf32>
    %22 = vector.broadcast %21 : vector<1x4x1xf32> to vector<1x4x16xf32>
    %23 = arith.mulf %7, %22 : vector<1x4x16xf32>
    %24 = vector.broadcast %19 : vector<1x4x1xf32> to vector<1x4x16xf32>
    %25 = arith.addf %23, %24 : vector<1x4x16xf32>
    %c0_10 = arith.constant 0 : index
    %c0_11 = arith.constant 0 : index
    %c0_12 = arith.constant 0 : index
    %26 = vector.load %arg4[%c0_10, %c0_11, %c0_12] : memref<1x4x16xf32, #tpu.memory_space<vmem>>, vector<1x4x16xf32>
    tpu.vector_store %arg4[%c0_10, %c0_11, %c0_12], %25 {strides = array<i32>} : memref<1x4x16xf32, #tpu.memory_space<vmem>>, vector<1x4x16xf32>,
    return
  }
  func.func @transform_0(%arg0: i32) -> (i32, i32, i32) {
    %c0_i32 = arith.constant 0 : i32
    %c0_i32_0 = arith.constant 0 : i32
    %c0_i32_1 = arith.constant 0 : i32
    return %arg0, %c0_i32, %c0_i32_0 : i32, i32, i32
  }
  func.func @transform_1(%arg0: i32) -> (i32, i32) {
    %c0_i32 = arith.constant 0 : i32
    %c0_i32_0 = arith.constant 0 : i32
    %c0_i32_1 = arith.constant 0 : i32
    return %c0_i32, %c0_i32_0 : i32, i32
  }
  func.func @transform_2(%arg0: i32) -> (i32, i32) {
    %c0_i32 = arith.constant 0 : i32
    %c0_i32_0 = arith.constant 0 : i32
    %c0_i32_1 = arith.constant 0 : i32
    return %c0_i32, %c0_i32_0 : i32, i32
  }
  func.func @transform_3(%arg0: i32) -> (i32, i32, i32) {
    %c0_i32 = arith.constant 0 : i32
    %c0_i32_0 = arith.constant 0 : i32
    %c0_i32_1 = arith.constant 0 : i32
    return %arg0, %c0_i32, %c0_i32_0 : i32, i32, i32
  }
}

</mosaic_0001>

<bundles_post_ra>
// kernel: tpu_custom_call.1
= control target key start
LH: loop header
LB: loop body
LE: loop exit
PB: predicated region body
PF: predicated region fallthrough
CT: control target
= control target key end

     0   :  { %8 = vsyncpa [#allocation3], 0  ;;  %s537_s0 = inlined_call_operand.vmem [shape: f32[2,4,16], index: 0, kind: input, shape index: {}]   ;;  %s538_s1 = inlined_call_operand.vmem [shape: f32[4,1], index: 1, kind: input, shape index: {}]   ;;  %s539_s2 = inlined_call_operand.vmem [shape: f32[4,1], index: 2, kind: input, shape index: {}]   ;;  %s540_s3 = inlined_call_operand.hbm [shape: f32[2,4,16], index: 3, kind: output, shape index: {}]  }
   0x1   :  { %10 = vsyncpa [#allocation3 + $0x1], 0  ;;  %s443_s12 = smov 0   ;;  %s445_s13 = smov 0  }
   0x2   :  { %s447_s14 = smov 0   ;;  %s449_s15 = smov 0  }
   0x3 LB: > { %s464_s16 = sadd.s32 4294967295, %s420_s15   ;;  %s298_s17 = sadd.s32 4294967294, %s420_s15   ;;  %s420_s15 = sphi %s449_s15, %s546_s15   ;;  %s416_s14 = sphi %s447_s14, %s545_s14   ;;  %s412_s13 = sphi %s445_s13, %s544_s13   ;;  %s408_s12 = sphi %s443_s12, %s543_s12  }
   0x4   : > { %s468_s18 = sadd.s32 1, %s420_s15   ;;  %s91_s19 = sadd.s32 1, %s416_s14 }
   0x5   : > { %s88_s20 = ssub.s32 %s420_s15, %s468_s18  ;;  %p101_p0 = scmp.ne.s32.totalorder %s416_s14, %s412_s13 }
   0x6   : > { %p89_p1 = scmp.eq.s32.totalorder %s88_s20, 0  ;;  %p102_p2 = scmp.eq.s32.totalorder %s464_s16, 1 }
   0x7   : > { %p107_p3 = scmp.ne.s32.totalorder %s412_s13, %s408_s12  ;;  %p108_p4 = scmp.eq.s32.totalorder %s298_s17, 1 }
   0x8   : > { %s479_s21 = scalar_select %p89_p1, %s416_s14, %s91_s19  }
   0x9   : > { %p481_p5 = por %p102_p2, %p101_p0  ;;  %p485_p6 = por %p108_p4, %p107_p3 }
   0xa   : > { %p301_p7 = scmp.ge.s32.totalorder %s420_s15, 1  ;;  %p139_p8 = scmp.lt.s32.totalorder %s420_s15, 3 }
   0xc   : > { %p140_p9 = pnand %p301_p7, %p139_p8 }
   0xd   : > { %p162_p10 = scmp.lt.s32.totalorder (!%p140_p9), %s464_s16, 1  ;;  %s159_s17 = sand.u32 (!%p140_p9), 1, %s412_s13  }
   0xe   : > { %143 = sbr.rel (%p140_p9) target bundleno = 593 (0x251), region = 32  ;;  %s302_s19 = sshll.u32 (!%p140_p9), %s159_s17, 2 }
   0xf   : > { %s305_s20 = sshll.u32 (!%p140_p9), %s464_s16, 2  ;;  %s161_s27 = scalar_lea.vmem (!%p140_p9), [#allocation2], %s302_s19 }
  0x10   : > { %s234_s26 = scalar_lea.hbm (!%p140_p9), %s540_s3, %s305_s20  ;;  %s378_s7 = scalar_lea.hbm (!%p140_p9), %s540_s3, 8 }
  0x13   : > { %s163_s24 = scalar_select %p162_p10, %s464_s16, 1  ;;  %vm167_vm0 = vcmask 125952   ;;  %v422_v28 = vmov 0   ;;  %v206_v29 = vld [vmem:[%s538_s1] sm:$0xf] }
  0x14   : > { %354 = vset.pattern.permute.xlu1 %v422_v28  ;;  %355 = vset.pattern.permute.xlu0 %v422_v28  ;;  %v207_v32 = vld [vmem:[%s539_s2] sm:$0xf] }
  0x15   : > { %s303_s25 = sshll.u32 %s163_s24, 2 }
  0x16   : > { %s165_s28 = scalar_lea.vmem %s537_s0, %s303_s25 }
  0x17   : > { %v166_v0 = vld [vmem:[%s165_s28] sm:$0xf]  ;;  %s236_s28 = sshll.u32 %s161_s27, 4  ;;  %s237_s28 = int_to_ptr.vmem [resolvable:$true] %s236_s28 }
  0x18   : > { %v168_v1 = vsel %vm167_vm0, %v166_v0, 0.0 }
  0x19   : > { %169 = vadd.xlane.f32.xlu0 %v168_v1 }
  0x8c   : > { %v170_v2 = vpop.xlane.xlu0 %169 }
  0x8d   : > { %v171_v3 = vrot.slane %v170_v2, 4 }
  0x8f   : > { %v172_v4 = vadd.f32 %v171_v3, %v170_v2 }
  0x91   : > { %v173_v5 = vrot.slane %v172_v4, 2 }
  0x93   : > { %v174_v6 = vadd.f32 %v173_v5, %v172_v4 }
  0x95   : > { %v175_v7 = vrot.slane %v174_v6, 1 }
  0x97   : > { %v176_v8 = vadd.f32 %v175_v7, %v174_v6 }
  0x99   : > { %308 = vpush %v176_v8 }
  0xca   : > { %s309_s29 = spop %308 }
  0xcb   : > { %s178_s30 = smul.f32 0.015625, %s309_s29  ;;  %s238_s29 = sshll.u32 %s234_s26, 4  ;;  %s239_s29 = int_to_ptr.hbm [resolvable:$true] %s238_s29 }
  0xcd   : > { %v179_v9 = vstv %s178_s30  ;;  %s224_s30 = scalar_lea.sflag [#allocation3], %s159_s17 }
  0xce   : > { %v180_v10 = vsub.f32 %v166_v0, %v179_v9 }
  0xd0   : > { %v181_v11 = vmul.f32 %v180_v10, %v180_v10 }
  0xd2   : > { %v182_v12 = vsel %vm167_vm0, %v181_v11, 0.0 }
  0xd3   : > { %183 = vadd.xlane.f32.xlu0 %v182_v12 }
 0x146   : > { %v184_v13 = vpop.xlane.xlu0 %183 }
 0x147   : > { %v185_v14 = vrot.slane %v184_v13, 4 }
 0x149   : > { %v186_v15 = vadd.f32 %v185_v14, %v184_v13 }
 0x14b   : > { %v187_v16 = vrot.slane %v186_v15, 2 }
 0x14d   : > { %v188_v17 = vadd.f32 %v187_v16, %v186_v15 }
 0x14f   : > { %v189_v18 = vrot.slane %v188_v17, 1 }
 0x151   : > { %v190_v19 = vadd.f32 %v189_v18, %v188_v17 }
 0x153   : > { %310 = vpush %v190_v19 }
 0x184   : > { %s311_s4 = spop %310 }
 0x185   : > { %s192_s5 = smul.f32 0.015625, %s311_s4  ;;  %s372_s4 = sshra.s32 %s239_s29, 4  ;;  %s373_s4 = int_to_ptr.hbm [resolvable:$true] %s372_s4 }
 0x186   : > { %p379_p0 = scmp.lt.s32.totalorder %s373_s4, %s540_s3 }
 0x187   : > { %s193_s6 = sadd.f32 1e-06, %s192_s5  ;;  %s374_s5 = scalar_lea.hbm %s373_s4, 4 }
 0x188   : > { %p375_p11 = scmp.ne.s32.totalorder %s373_s4, %s374_s5  ;;  %p380_p1 = scmp.lt.s32.totalorder %s378_s7, %s374_s5 }
 0x189   : > { %v194_v20 = vstv %s193_s6 }
 0x18a   : > { %356 = vrsqrt.f32 %v194_v20  ;;  %vm201_vm2 = vweird.f32 %v194_v20  ;;  %p376_p12 = pnand %p375_p11, %p481_p5  ;;  %p381_p2 = por %p380_p1, %p379_p0 }
 0x18c   : > { %p377_p13 = pneg %p376_p12 }
 0x18e   : > { %p382_p3 = pnand %p381_p2, %p377_p13 }
 0x190   : > { %v357_v21 = vpop.eup %356 }
 0x191   : > { %v196_v22 = vmul.f32 %v357_v21, %v194_v20  ;;  %vm202_vm1 = vweird.f32 %v357_v21 }
 0x192   : > { %vm203_vm3 = vmor %vm201_vm2, %vm202_vm1 }
 0x193   : > { %v197_v23 = vmul.f32 %v357_v21, %v196_v22 }
 0x195   : > { %v198_v24 = vmul.f32 0.5, %v197_v23 }
 0x197   : > { %v199_v25 = vsub.f32 1.5, %v198_v24 }
 0x199   : > { %v200_v26 = vmul.f32 %v357_v21, %v199_v25 }
 0x19b   : > { %v204_v27 = vsel %vm203_vm3, %v357_v21, %v200_v26 }
 0x19c   : > { %312 = vpush %v204_v27 }
 0x1cd   : > { %s313_s9 = spop %312 }
 0x1ce   : > { %v208_v30 = vstv %s313_s9 }
 0x1cf   : > { %v209_v31 = vmul.f32 %v208_v30, %v206_v29 }
 0x1d1   : > { %212 = vperm.xlu1 %354, %v209_v31  }
 0x1d9   : > { %218 = vperm.xlu1 %354, %v207_v32  }
 0x243   : > { %v213_v33 = vpop.permute.xlu1 %212 }
 0x244   : > { %v215_v34 = vmul.f32 %v213_v33, %v180_v10 }
 0x24b   : > { %v219_v35 = vpop.permute.xlu1 %218 }
 0x24c   : > { %v221_v36 = vadd.f32 %v219_v35, %v215_v34 }
 0x24e   : > { %222 = vst.msk [vmem:[%s161_s27] sm:$0xf] %vm167_vm0, %v221_v36 }
 0x24f   : > { %385 = shalt.err (!%p382_p3)
}
 0x250   : > { %314 = dma.vmem_to_hbm [thread:$0]  (%p481_p5), %s237_s28, 64, %s239_s29, %s224_s30  }
 0x251 PF: > { %p320_p4 = scmp.ge.s32.totalorder %s420_s15, 2  ;;  %s250_s10 = sand.u32 1, %s408_s12  }
 0x252   : > { %s251_s11 = scalar_lea.sflag [#allocation3], %s250_s10 }
 0x253   : > { %p317_p7 = pnand %p320_p4, %p485_p6 }
 0x255   : > { %p318_p8 = pneg %p317_p7 }
 0x257   : > { %403 = dma.done.wait (%p318_p8), %s251_s11, 64  }
 0x258   : > { %405 = vsyncadd (%p318_p8), %s251_s11, 4294967232  ;;  %p13_p9 = scmp.ge.s32.totalorder %s468_s18, 4   ;;  %s543_s12 = smov %s412_s13 }
 0x259   : > { %s544_s13 = smov %s416_s14  ;;  %s545_s14 = smov %s479_s21 }
 0x25a   : > { %s546_s15 = smov %s468_s18  ;;  %15 = sbr.rel (!%p13_p9) target bundleno = 3 (0x3), region = 67 }
 0x25f   :  { %257 = vsyncpa [#allocation3], 1 }
 0x260   :  { %259 = vsyncpa [#allocation3 + $0x1], 1 }

</bundles_post_ra>
